<compile_context>
chip_gen: v7x
topology: tpu7x:2x2x1
jax: 0.10.0
libtpu: 0.0.40
codegen_flags: <defaults>
</compile_context>

<pallas_src>
import numpy as np
import jax
import jax.numpy as jnp
from jax.experimental import pallas as pl
from jax.experimental.pallas import tpu as pltpu

NUM_CAMS = 8           # num_cams
L_FREQ = 8             # positional-encoding frequencies
PE_DIM = 2 * L_FREQ    # 16
HIDDEN = 32            # MLP hidden width (per head)
HID2 = 2 * HIDDEN      # fused (trans|rots) hidden width = 64
HEAD = 8               # padded head width (trans uses cols 0:3, rots cols 0:4)
LANE = 128             # TPU lane width

# compacted weight-slab row layout
_W1_R0, _W1_R1 = 0, PE_DIM                 # rows   0:16   -> [tw1 | rw1]
_W2_R0, _W2_R1 = _W1_R1, _W1_R1 + HID2     # rows  16:80   -> block-diag [tw2 ; rw2]
_W3_R0, _W3_R1 = _W2_R1, _W2_R1 + HID2     # rows  80:144  -> block-diag [tw3 ; rw3]
_CB_R0 = _W3_R1                            # rows 144:152  -> b1,b2,b3,freq,phase
W_ROWS = _CB_R0 + 8                        # 152 (8-sublane aligned)


def _pose_kernel(idx_ref, ini_ref, w_ref, out_ref):
    f32 = jnp.float32

    x = idx_ref[...]                              # (N,1)  normalized cam index
    ini = ini_ref[...]                            # (N,16) init_c2w row-major

    # Compacted weight slab: every block 8-sublane aligned, 128-lane dense.
    w1 = w_ref[_W1_R0:_W1_R1, :]                  # (16,128): [tw1 | rw1] in cols 0:64
    w2 = w_ref[_W2_R0:_W2_R1, :]                  # (64,128): block-diag [tw2 ; rw2]
    w3 = w_ref[_W3_R0:_W3_R1, :]                  # (64,128): block-diag [tw3 ; rw3]
    cb = w_ref[_CB_R0:_CB_R0 + 8, :]              # consts block
    b1 = cb[0:1, :]                               # (1,128) sublane-broadcast adds
    b2 = cb[1:2, :]
    b3 = cb[2:3, :]
    freq = cb[3:4, :]
    phase = cb[4:5, :]

    # Sinusoidal cam-index embedding; only the first PE_DIM lanes are used.
    pe = jnp.sin(x * freq + phase)                # (N,128) on VPU/EUP
    pe16 = pe[:, 0:PE_DIM]                        # (N,16)  real K for layer 1

    # Fused TransNet + RotsNet MLP: three MXU pushes with K = 16 / 64 / 64.
    h = jnp.maximum(jnp.dot(pe16, w1, preferred_element_type=f32) + b1, 0.0)
    h = h[:, 0:HID2]                              # (N,64)
    h = jnp.maximum(jnp.dot(h, w2, preferred_element_type=f32) + b2, 0.0)
    h = h[:, 0:HID2]                              # (N,64)
    head = jnp.dot(h, w3, preferred_element_type=f32) + b3       # (N,128)

    # TransNet output t (cols 0:3); RotsNet quaternion (cols 8:12).
    t0 = head[:, 0:1]
    t1 = head[:, 1:2]
    t2 = head[:, 2:3]
    qw = head[:, HEAD + 0:HEAD + 1]
    qx = head[:, HEAD + 1:HEAD + 2]
    qy = head[:, HEAD + 2:HEAD + 3]
    qz = head[:, HEAD + 3:HEAD + 4]

    # Epsilon-guarded normalization; rsqrt goes to the EUP slot (free-ish).
    inv_n = jax.lax.rsqrt(qw * qw + qx * qx + qy * qy + qz * qz + 1e-12)
    qw = qw * inv_n
    qx = qx * inv_n
    qy = qy * inv_n
    qz = qz * inv_n

    r00 = 1.0 - 2.0 * (qy * qy + qz * qz)
    r01 = 2.0 * (qx * qy - qw * qz)
    r02 = 2.0 * (qx * qz + qw * qy)
    r10 = 2.0 * (qx * qy + qw * qz)
    r11 = 1.0 - 2.0 * (qx * qx + qz * qz)
    r12 = 2.0 * (qy * qz - qw * qx)
    r20 = 2.0 * (qx * qz - qw * qy)
    r21 = 2.0 * (qy * qz + qw * qx)
    r22 = 1.0 - 2.0 * (qx * qx + qy * qy)

    # inv([[R,t],[0,0,0,1]]) = [[R^T, -R^T t],[0,0,0,1]]  (R orthonormal).
    ti0 = -(r00 * t0 + r10 * t1 + r20 * t2)
    ti1 = -(r01 * t0 + r11 * t1 + r21 * t2)
    ti2 = -(r02 * t0 + r12 * t1 + r22 * t2)

    minv = [[r00, r10, r20, ti0],
            [r01, r11, r21, ti1],
            [r02, r12, r22, ti2]]

    # out = inv(c2w) @ init_c2w, assembled as width-4 row chunks (4 concat
    # pieces instead of 20 width-1 pieces -> far fewer lane-placement ops).
    ini_rows = [ini[:, 0:4], ini[:, 4:8], ini[:, 8:12], ini[:, 12:16]]
    rows = []
    for i in range(3):
        acc = minv[i][0] * ini_rows[0]
        acc = acc + minv[i][1] * ini_rows[1]
        acc = acc + minv[i][2] * ini_rows[2]
        acc = acc + minv[i][3] * ini_rows[3]
        rows.append(acc)                          # (N,4)
    rows.append(ini_rows[3])                      # bottom row of inv(c2w) is [0,0,0,1]

    res = jnp.concatenate(rows, axis=-1)          # (N,16)
    pad = jnp.zeros((res.shape[0], LANE - 16), f32)
    out_ref[...] = jnp.concatenate([res, pad], axis=-1)   # single lane-dense store


def pack_weights(params):
    """Pack all MLP weights/biases + PE constants into one (152,128) f32 slab."""
    slab = np.zeros((W_ROWS, LANE), np.float32)
    # W1: [tw1 | rw1] in rows 0:16, cols 0:64
    slab[_W1_R0:_W1_R0 + PE_DIM, 0:HIDDEN] = np.asarray(params['tw1'])
    slab[_W1_R0:_W1_R0 + PE_DIM, HIDDEN:HID2] = np.asarray(params['rw1'])
    # W2: block-diagonal, rows 16:80
    slab[_W2_R0:_W2_R0 + HIDDEN, 0:HIDDEN] = np.asarray(params['tw2'])
    slab[_W2_R0 + HIDDEN:_W2_R0 + HID2, HIDDEN:HID2] = np.asarray(params['rw2'])
    # W3: block-diagonal, rows 80:144 (trans head -> cols 0:8, rots -> cols 8:16)
    slab[_W3_R0:_W3_R0 + HIDDEN, 0:HEAD] = np.asarray(params['tw3'])
    slab[_W3_R0 + HIDDEN:_W3_R0 + HID2, HEAD:2 * HEAD] = np.asarray(params['rw3'])
    # consts block, rows 144:152
    slab[_CB_R0 + 0, 0:HIDDEN] = np.asarray(params['tb1'])[0]
    slab[_CB_R0 + 0, HIDDEN:HID2] = np.asarray(params['rb1'])[0]
    slab[_CB_R0 + 1, 0:HIDDEN] = np.asarray(params['tb2'])[0]
    slab[_CB_R0 + 1, HIDDEN:HID2] = np.asarray(params['rb2'])[0]
    slab[_CB_R0 + 2, 0:HEAD] = np.asarray(params['tb3'])[0]
    slab[_CB_R0 + 2, HEAD:2 * HEAD] = np.asarray(params['rb3'])[0]
    slab[_CB_R0 + 3, 0:PE_DIM] = np.asarray(params['freq'])[0]
    slab[_CB_R0 + 4, 0:PE_DIM] = np.asarray(params['phase'])[0]
    return jnp.asarray(slab)


def _forward_all_impl(weight_slab, idx_norm, init_c2w):
    n = idx_norm.shape[0]
    idx = idx_norm.astype(jnp.float32).reshape(n, 1)
    ini = init_c2w.astype(jnp.float32).reshape(n, 16)
    out = pl.pallas_call(
        _pose_kernel,
        out_shape=jax.ShapeDtypeStruct((n, LANE), jnp.float32),
        in_specs=[pl.BlockSpec(memory_space=pltpu.MemorySpace.VMEM)] * 3,
        out_specs=pl.BlockSpec(memory_space=pltpu.MemorySpace.VMEM),
        compiler_params=pltpu.CompilerParams(vmem_limit_bytes=4 * 1024 * 1024),
    )(idx, ini, weight_slab)
    return out[:, :16].reshape(n, 4, 4)


# Single jitted launch: reshape/cast + pallas_call + slice + reshape all fused.
forward_all = jax.jit(_forward_all_impl)


def forward(weight_slab, idx_norm, init_c2w, cam_id):
    """Equivalent of LearnPoseNet_decouple.forward(cam_id): returns a (4,4) c2w.
    cam_id must be a static Python int (same constraint as the PyTorch module's
    int(cam_id)). Computes all cameras once and indexes host-side."""
    return forward_all(weight_slab, idx_norm, init_c2w)[int(cam_id)]


def make_params(key):
    ks = jax.random.split(key, 6)

    def linear(k, fin, fout):
        bound = 1.0 / np.sqrt(fin)
        return jax.random.uniform(k, (fin, fout), jnp.float32, -bound, bound)

    freqs = (2.0 ** np.arange(L_FREQ)) * np.pi
    freq = np.concatenate([freqs, freqs]).astype(np.float32)[None, :]           # (1,PE)
    phase = np.concatenate([np.zeros(L_FREQ), np.full(L_FREQ, np.pi / 2)]
                           ).astype(np.float32)[None, :]                         # (1,PE)

    rb3 = np.zeros((1, HEAD), np.float32)
    rb3[0, 0] = 1.0   # bias quaternion towards identity rotation

    return {
        'tw1': linear(ks[0], PE_DIM, HIDDEN), 'tb1': jnp.zeros((1, HIDDEN), jnp.float32),
        'tw2': linear(ks[1], HIDDEN, HIDDEN), 'tb2': jnp.zeros((1, HIDDEN), jnp.float32),
        'tw3': linear(ks[2], HIDDEN, HEAD),   'tb3': jnp.zeros((1, HEAD), jnp.float32),
        'rw1': linear(ks[3], PE_DIM, HIDDEN), 'rb1': jnp.zeros((1, HIDDEN), jnp.float32),
        'rw2': linear(ks[4], HIDDEN, HIDDEN), 'rb2': jnp.zeros((1, HIDDEN), jnp.float32),
        'rw3': linear(ks[5], HIDDEN, HEAD),   'rb3': jnp.asarray(rb3),
        'freq': jnp.asarray(freq), 'phase': jnp.asarray(phase),
    }


def reference(params, idx_norm, init_c2w):
    """Pure-JAX reference mirroring the PyTorch forward semantics."""
    pe = jnp.sin(idx_norm * params['freq'] + params['phase'])

    def mlp(p):
        h = jnp.maximum(pe @ params[p + 'w1'] + params[p + 'b1'], 0.0)
        h = jnp.maximum(h @ params[p + 'w2'] + params[p + 'b2'], 0.0)
        return h @ params[p + 'w3'] + params[p + 'b3']

    t = mlp('t')[:, :3]
    q = mlp('r')[:, :4]
    q = q * (1.0 / jnp.sqrt(jnp.sum(q * q, axis=1, keepdims=True)))
    w, x, y, z = q[:, 0], q[:, 1], q[:, 2], q[:, 3]
    R = jnp.stack([
        jnp.stack([1 - 2 * (y * y + z * z), 2 * (x * y - w * z), 2 * (x * z + w * y)], axis=-1),
        jnp.stack([2 * (x * y + w * z), 1 - 2 * (x * x + z * z), 2 * (y * z - w * x)], axis=-1),
        jnp.stack([2 * (x * z - w * y), 2 * (y * z + w * x), 1 - 2 * (x * x + y * y)], axis=-1),
    ], axis=1)                                                     # (N,3,3)
    c2w = jnp.concatenate([R, t[:, :, None]], axis=2)              # (N,3,4)
    bottom = jnp.tile(jnp.array([[[0., 0., 0., 1.]]], jnp.float32), (NUM_CAMS, 1, 1))
    c2w = jnp.concatenate([c2w, bottom], axis=1)                   # (N,4,4)
    c2w = jnp.linalg.inv(c2w)
    return jnp.einsum('nij,njk->nik', c2w, init_c2w)


if __name__ == "__main__":
    key = jax.random.PRNGKey(0)
    pkey, ikey = jax.random.split(key)
    params = make_params(pkey)
    weight_slab = pack_weights(params)

    idx_norm = (jnp.arange(NUM_CAMS, dtype=jnp.float32) / NUM_CAMS).reshape(NUM_CAMS, 1)
    init_c2w = (jnp.eye(4, dtype=jnp.float32)[None]
                + 0.1 * jax.random.normal(ikey, (NUM_CAMS, 4, 4), jnp.float32))

    c2w_all = jax.block_until_ready(forward_all(weight_slab, idx_norm, init_c2w))
    ref = jax.block_until_ready(reference(params, idx_norm, init_c2w))
    np.testing.assert_allclose(np.asarray(c2w_all), np.asarray(ref), rtol=2e-3, atol=2e-3)

    # Module-style single-camera forward (what LearnPoseNet_decouple.forward returns)
    _c2w_cam3 = forward(weight_slab, idx_norm, init_c2w, cam_id=3)
    jax.block_until_ready(_c2w_cam3)

    print("KERNEL_OK")
</pallas_src>

<mosaic_0001>
module attributes {stable_mosaic.version = 11 : i64} {
  func.func @_pose_kernel(%arg0: memref<8x1xf32, #tpu.memory_space<vmem>>, %arg1: memref<8x16xf32, #tpu.memory_space<vmem>>, %arg2: memref<152x128xf32, #tpu.memory_space<vmem>>, %arg3: memref<8x128xf32, #tpu.memory_space<vmem>>) attributes {dimension_semantics = [], scalar_prefetch = 0 : i64, scratch_operands = 0 : i64, tpu.core_type = #tpu.core_type<tc>} {
    %c0 = arith.constant 0 : index
    %c0_0 = arith.constant 0 : index
    %0 = vector.load %arg0[%c0, %c0_0] : memref<8x1xf32, #tpu.memory_space<vmem>>, vector<8x1xf32>
    %c0_1 = arith.constant 0 : index
    %c0_2 = arith.constant 0 : index
    %1 = vector.load %arg1[%c0_1, %c0_2] : memref<8x16xf32, #tpu.memory_space<vmem>>, vector<8x16xf32>
    %c0_3 = arith.constant 0 : index
    %c0_4 = arith.constant 0 : index
    %2 = vector.load %arg2[%c0_3, %c0_4] : memref<152x128xf32, #tpu.memory_space<vmem>>, vector<16x128xf32>
    %c16 = arith.constant 16 : index
    %c0_5 = arith.constant 0 : index
    %3 = vector.load %arg2[%c16, %c0_5] : memref<152x128xf32, #tpu.memory_space<vmem>>, vector<64x128xf32>
    %c80 = arith.constant 80 : index
    %c0_6 = arith.constant 0 : index
    %4 = vector.load %arg2[%c80, %c0_6] : memref<152x128xf32, #tpu.memory_space<vmem>>, vector<64x128xf32>
    %c144 = arith.constant 144 : index
    %c0_7 = arith.constant 0 : index
    %5 = vector.load %arg2[%c144, %c0_7] : memref<152x128xf32, #tpu.memory_space<vmem>>, vector<8x128xf32>
    %6 = vector.extract_strided_slice %5 {offsets = [0, 0], sizes = [1, 128], strides = [1, 1]} : vector<8x128xf32> to vector<1x128xf32>
    %7 = vector.extract_strided_slice %5 {offsets = [1, 0], sizes = [1, 128], strides = [1, 1]} : vector<8x128xf32> to vector<1x128xf32>
    %8 = vector.extract_strided_slice %5 {offsets = [2, 0], sizes = [1, 128], strides = [1, 1]} : vector<8x128xf32> to vector<1x128xf32>
    %9 = vector.extract_strided_slice %5 {offsets = [3, 0], sizes = [1, 128], strides = [1, 1]} : vector<8x128xf32> to vector<1x128xf32>
    %10 = vector.extract_strided_slice %5 {offsets = [4, 0], sizes = [1, 128], strides = [1, 1]} : vector<8x128xf32> to vector<1x128xf32>
    %11 = vector.broadcast %0 : vector<8x1xf32> to vector<8x128xf32>
    %12 = vector.broadcast %9 : vector<1x128xf32> to vector<8x128xf32>
    %13 = arith.mulf %11, %12 : vector<8x128xf32>
    %14 = vector.broadcast %10 : vector<1x128xf32> to vector<8x128xf32>
    %15 = arith.addf %13, %14 : vector<8x128xf32>
    %16 = math.sin %15 : vector<8x128xf32>
    %17 = vector.extract_strided_slice %16 {offsets = [0, 0], sizes = [8, 16], strides = [1, 1]} : vector<8x128xf32> to vector<8x16xf32>
    %cst = arith.constant dense<0.000000e+00> : vector<8x128xf32>
    %18 = tpu.matmul %17, %2, %cst {dimension_numbers = #tpu.dot_dimension_numbers<[1], [0], [0], [1], [0, 0, 1, 1], [], []>} : vector<8x16xf32>, vector<16x128xf32>, vector<8x128xf32> -> vector<8x128xf32>
    %19 = vector.broadcast %6 : vector<1x128xf32> to vector<8x128xf32>
    %20 = arith.addf %18, %19 : vector<8x128xf32>
    %cst_8 = arith.constant 0.000000e+00 : f32
    %21 = vector.broadcast %cst_8 : f32 to vector<8x128xf32>
    %22 = arith.maximumf %20, %21 : vector<8x128xf32>
    %23 = vector.extract_strided_slice %22 {offsets = [0, 0], sizes = [8, 64], strides = [1, 1]} : vector<8x128xf32> to vector<8x64xf32>
    %cst_9 = arith.constant dense<0.000000e+00> : vector<8x128xf32>
    %24 = tpu.matmul %23, %3, %cst_9 {dimension_numbers = #tpu.dot_dimension_numbers<[1], [0], [0], [1], [0, 0, 1, 1], [], []>} : vector<8x64xf32>, vector<64x128xf32>, vector<8x128xf32> -> vector<8x128xf32>
    %25 = vector.broadcast %7 : vector<1x128xf32> to vector<8x128xf32>
    %26 = arith.addf %24, %25 : vector<8x128xf32>
    %cst_10 = arith.constant 0.000000e+00 : f32
    %27 = vector.broadcast %cst_10 : f32 to vector<8x128xf32>
    %28 = arith.maximumf %26, %27 : vector<8x128xf32>
    %29 = vector.extract_strided_slice %28 {offsets = [0, 0], sizes = [8, 64], strides = [1, 1]} : vector<8x128xf32> to vector<8x64xf32>
    %cst_11 = arith.constant dense<0.000000e+00> : vector<8x128xf32>
    %30 = tpu.matmul %29, %4, %cst_11 {dimension_numbers = #tpu.dot_dimension_numbers<[1], [0], [0], [1], [0, 0, 1, 1], [], []>} : vector<8x64xf32>, vector<64x128xf32>, vector<8x128xf32> -> vector<8x128xf32>
    %31 = vector.broadcast %8 : vector<1x128xf32> to vector<8x128xf32>
    %32 = arith.addf %30, %31 : vector<8x128xf32>
    %33 = vector.extract_strided_slice %32 {offsets = [0, 0], sizes = [8, 1], strides = [1, 1]} : vector<8x128xf32> to vector<8x1xf32>
    %34 = vector.extract_strided_slice %32 {offsets = [0, 1], sizes = [8, 1], strides = [1, 1]} : vector<8x128xf32> to vector<8x1xf32>
    %35 = vector.extract_strided_slice %32 {offsets = [0, 2], sizes = [8, 1], strides = [1, 1]} : vector<8x128xf32> to vector<8x1xf32>
    %36 = vector.extract_strided_slice %32 {offsets = [0, 8], sizes = [8, 1], strides = [1, 1]} : vector<8x128xf32> to vector<8x1xf32>
    %37 = vector.extract_strided_slice %32 {offsets = [0, 9], sizes = [8, 1], strides = [1, 1]} : vector<8x128xf32> to vector<8x1xf32>
    %38 = vector.extract_strided_slice %32 {offsets = [0, 10], sizes = [8, 1], strides = [1, 1]} : vector<8x128xf32> to vector<8x1xf32>
    %39 = vector.extract_strided_slice %32 {offsets = [0, 11], sizes = [8, 1], strides = [1, 1]} : vector<8x128xf32> to vector<8x1xf32>
    %40 = arith.mulf %36, %36 : vector<8x1xf32>
    %41 = arith.mulf %37, %37 : vector<8x1xf32>
    %42 = arith.addf %40, %41 : vector<8x1xf32>
    %43 = arith.mulf %38, %38 : vector<8x1xf32>
    %44 = arith.addf %42, %43 : vector<8x1xf32>
    %45 = arith.mulf %39, %39 : vector<8x1xf32>
    %46 = arith.addf %44, %45 : vector<8x1xf32>
    %cst_12 = arith.constant 9.99999996E-13 : f32
    %47 = vector.broadcast %cst_12 : f32 to vector<8x1xf32>
    %48 = arith.addf %46, %47 : vector<8x1xf32>
    %49 = math.rsqrt %48 : vector<8x1xf32>
    %50 = arith.mulf %36, %49 : vector<8x1xf32>
    %51 = arith.mulf %37, %49 : vector<8x1xf32>
    %52 = arith.mulf %38, %49 : vector<8x1xf32>
    %53 = arith.mulf %39, %49 : vector<8x1xf32>
    %54 = arith.mulf %52, %52 : vector<8x1xf32>
    %55 = arith.mulf %53, %53 : vector<8x1xf32>
    %56 = arith.addf %54, %55 : vector<8x1xf32>
    %cst_13 = arith.constant 2.000000e+00 : f32
    %57 = vector.broadcast %cst_13 : f32 to vector<8x1xf32>
    %58 = arith.mulf %57, %56 : vector<8x1xf32>
    %cst_14 = arith.constant 1.000000e+00 : f32
    %59 = vector.broadcast %cst_14 : f32 to vector<8x1xf32>
    %60 = arith.subf %59, %58 : vector<8x1xf32>
    %61 = arith.mulf %51, %52 : vector<8x1xf32>
    %62 = arith.mulf %50, %53 : vector<8x1xf32>
    %63 = arith.subf %61, %62 : vector<8x1xf32>
    %cst_15 = arith.constant 2.000000e+00 : f32
    %64 = vector.broadcast %cst_15 : f32 to vector<8x1xf32>
    %65 = arith.mulf %64, %63 : vector<8x1xf32>
    %66 = arith.mulf %51, %53 : vector<8x1xf32>
    %67 = arith.mulf %50, %52 : vector<8x1xf32>
    %68 = arith.addf %66, %67 : vector<8x1xf32>
    %cst_16 = arith.constant 2.000000e+00 : f32
    %69 = vector.broadcast %cst_16 : f32 to vector<8x1xf32>
    %70 = arith.mulf %69, %68 : vector<8x1xf32>
    %71 = arith.mulf %51, %52 : vector<8x1xf32>
    %72 = arith.mulf %50, %53 : vector<8x1xf32>
    %73 = arith.addf %71, %72 : vector<8x1xf32>
    %cst_17 = arith.constant 2.000000e+00 : f32
    %74 = vector.broadcast %cst_17 : f32 to vector<8x1xf32>
    %75 = arith.mulf %74, %73 : vector<8x1xf32>
    %76 = arith.mulf %51, %51 : vector<8x1xf32>
    %77 = arith.mulf %53, %53 : vector<8x1xf32>
    %78 = arith.addf %76, %77 : vector<8x1xf32>
    %cst_18 = arith.constant 2.000000e+00 : f32
    %79 = vector.broadcast %cst_18 : f32 to vector<8x1xf32>
    %80 = arith.mulf %79, %78 : vector<8x1xf32>
    %cst_19 = arith.constant 1.000000e+00 : f32
    %81 = vector.broadcast %cst_19 : f32 to vector<8x1xf32>
    %82 = arith.subf %81, %80 : vector<8x1xf32>
    %83 = arith.mulf %52, %53 : vector<8x1xf32>
    %84 = arith.mulf %50, %51 : vector<8x1xf32>
    %85 = arith.subf %83, %84 : vector<8x1xf32>
    %cst_20 = arith.constant 2.000000e+00 : f32
    %86 = vector.broadcast %cst_20 : f32 to vector<8x1xf32>
    %87 = arith.mulf %86, %85 : vector<8x1xf32>
    %88 = arith.mulf %51, %53 : vector<8x1xf32>
    %89 = arith.mulf %50, %52 : vector<8x1xf32>
    %90 = arith.subf %88, %89 : vector<8x1xf32>
    %cst_21 = arith.constant 2.000000e+00 : f32
    %91 = vector.broadcast %cst_21 : f32 to vector<8x1xf32>
    %92 = arith.mulf %91, %90 : vector<8x1xf32>
    %93 = arith.mulf %52, %53 : vector<8x1xf32>
    %94 = arith.mulf %50, %51 : vector<8x1xf32>
    %95 = arith.addf %93, %94 : vector<8x1xf32>
    %cst_22 = arith.constant 2.000000e+00 : f32
    %96 = vector.broadcast %cst_22 : f32 to vector<8x1xf32>
    %97 = arith.mulf %96, %95 : vector<8x1xf32>
    %98 = arith.mulf %51, %51 : vector<8x1xf32>
    %99 = arith.mulf %52, %52 : vector<8x1xf32>
    %100 = arith.addf %98, %99 : vector<8x1xf32>
    %cst_23 = arith.constant 2.000000e+00 : f32
    %101 = vector.broadcast %cst_23 : f32 to vector<8x1xf32>
    %102 = arith.mulf %101, %100 : vector<8x1xf32>
    %cst_24 = arith.constant 1.000000e+00 : f32
    %103 = vector.broadcast %cst_24 : f32 to vector<8x1xf32>
    %104 = arith.subf %103, %102 : vector<8x1xf32>
    %105 = arith.mulf %60, %33 : vector<8x1xf32>
    %106 = arith.mulf %75, %34 : vector<8x1xf32>
    %107 = arith.addf %105, %106 : vector<8x1xf32>
    %108 = arith.mulf %92, %35 : vector<8x1xf32>
    %109 = arith.addf %107, %108 : vector<8x1xf32>
    %cst_25 = arith.constant 0.000000e+00 : f32
    %110 = vector.broadcast %cst_25 : f32 to vector<8x1xf32>
    %111 = arith.subf %110, %109 : vector<8x1xf32>
    %112 = arith.mulf %65, %33 : vector<8x1xf32>
    %113 = arith.mulf %82, %34 : vector<8x1xf32>
    %114 = arith.addf %112, %113 : vector<8x1xf32>
    %115 = arith.mulf %97, %35 : vector<8x1xf32>
    %116 = arith.addf %114, %115 : vector<8x1xf32>
    %cst_26 = arith.constant 0.000000e+00 : f32
    %117 = vector.broadcast %cst_26 : f32 to vector<8x1xf32>
    %118 = arith.subf %117, %116 : vector<8x1xf32>
    %119 = arith.mulf %70, %33 : vector<8x1xf32>
    %120 = arith.mulf %87, %34 : vector<8x1xf32>
    %121 = arith.addf %119, %120 : vector<8x1xf32>
    %122 = arith.mulf %104, %35 : vector<8x1xf32>
    %123 = arith.addf %121, %122 : vector<8x1xf32>
    %cst_27 = arith.constant 0.000000e+00 : f32
    %124 = vector.broadcast %cst_27 : f32 to vector<8x1xf32>
    %125 = arith.subf %124, %123 : vector<8x1xf32>
    %126 = vector.extract_strided_slice %1 {offsets = [0, 0], sizes = [8, 4], strides = [1, 1]} : vector<8x16xf32> to vector<8x4xf32>
    %127 = vector.extract_strided_slice %1 {offsets = [0, 4], sizes = [8, 4], strides = [1, 1]} : vector<8x16xf32> to vector<8x4xf32>
    %128 = vector.extract_strided_slice %1 {offsets = [0, 8], sizes = [8, 4], strides = [1, 1]} : vector<8x16xf32> to vector<8x4xf32>
    %129 = vector.extract_strided_slice %1 {offsets = [0, 12], sizes = [8, 4], strides = [1, 1]} : vector<8x16xf32> to vector<8x4xf32>
    %130 = vector.broadcast %60 : vector<8x1xf32> to vector<8x4xf32>
    %131 = arith.mulf %130, %126 : vector<8x4xf32>
    %132 = vector.broadcast %75 : vector<8x1xf32> to vector<8x4xf32>
    %133 = arith.mulf %132, %127 : vector<8x4xf32>
    %134 = arith.addf %131, %133 : vector<8x4xf32>
    %135 = vector.broadcast %92 : vector<8x1xf32> to vector<8x4xf32>
    %136 = arith.mulf %135, %128 : vector<8x4xf32>
    %137 = arith.addf %134, %136 : vector<8x4xf32>
    %138 = vector.broadcast %111 : vector<8x1xf32> to vector<8x4xf32>
    %139 = arith.mulf %138, %129 : vector<8x4xf32>
    %140 = arith.addf %137, %139 : vector<8x4xf32>
    %141 = vector.broadcast %65 : vector<8x1xf32> to vector<8x4xf32>
    %142 = arith.mulf %141, %126 : vector<8x4xf32>
    %143 = vector.broadcast %82 : vector<8x1xf32> to vector<8x4xf32>
    %144 = arith.mulf %143, %127 : vector<8x4xf32>
    %145 = arith.addf %142, %144 : vector<8x4xf32>
    %146 = vector.broadcast %97 : vector<8x1xf32> to vector<8x4xf32>
    %147 = arith.mulf %146, %128 : vector<8x4xf32>
    %148 = arith.addf %145, %147 : vector<8x4xf32>
    %149 = vector.broadcast %118 : vector<8x1xf32> to vector<8x4xf32>
    %150 = arith.mulf %149, %129 : vector<8x4xf32>
    %151 = arith.addf %148, %150 : vector<8x4xf32>
    %152 = vector.broadcast %70 : vector<8x1xf32> to vector<8x4xf32>
    %153 = arith.mulf %152, %126 : vector<8x4xf32>
    %154 = vector.broadcast %87 : vector<8x1xf32> to vector<8x4xf32>
    %155 = arith.mulf %154, %127 : vector<8x4xf32>
    %156 = arith.addf %153, %155 : vector<8x4xf32>
    %157 = vector.broadcast %104 : vector<8x1xf32> to vector<8x4xf32>
    %158 = arith.mulf %157, %128 : vector<8x4xf32>
    %159 = arith.addf %156, %158 : vector<8x4xf32>
    %160 = vector.broadcast %125 : vector<8x1xf32> to vector<8x4xf32>
    %161 = arith.mulf %160, %129 : vector<8x4xf32>
    %162 = arith.addf %159, %161 : vector<8x4xf32>
    %163 = tpu.concatenate %140, %151, %162, %129 in 1 : vector<8x4xf32>, vector<8x4xf32>, vector<8x4xf32>, vector<8x4xf32> -> vector<8x16xf32>
    %cst_28 = arith.constant 0.000000e+00 : f32
    %164 = vector.broadcast %cst_28 : f32 to vector<8x112xf32>
    %165 = tpu.concatenate %163, %164 in 1 : vector<8x16xf32>, vector<8x112xf32> -> vector<8x128xf32>
    %c0_29 = arith.constant 0 : index
    %c0_30 = arith.constant 0 : index
    %166 = vector.load %arg3[%c0_29, %c0_30] : memref<8x128xf32, #tpu.memory_space<vmem>>, vector<8x128xf32>
    tpu.vector_store %arg3[%c0_29, %c0_30], %165 {strides = array<i32>} : memref<8x128xf32, #tpu.memory_space<vmem>>, vector<8x128xf32>,
    return
  }
}

</mosaic_0001>

<bundles_post_ra>
// kernel: _forward_all_impl.1
= control target key start
LH: loop header
LB: loop body
LE: loop exit
PB: predicated region body
PF: predicated region fallthrough
CT: control target
= control target key end

     0   :  { %8 = vsyncpa [#allocation3], 0  ;;  %s863_s12 = smov [#allocation2]   ;;  %s1046_s0 = inlined_call_operand.vmem [shape: f32[8,1], index: 0, kind: input, shape index: {}]   ;;  %s1047_s1 = inlined_call_operand.vmem [shape: f32[8,16], index: 1, kind: input, shape index: {}]   ;;  %s1048_s2 = inlined_call_operand.hbm [shape: f32[152,128], index: 2, kind: input, shape index: {}]   ;;  %s1049_s3 = inlined_call_operand.vmem [shape: f32[8,128], index: 3, kind: output, shape index: {}]  }
   0x1   :  { %s18_s13 = sshll.u32 %s863_s12, 4  ;;  %s839_s16 = scalar_lea.hbm %s1048_s2, 2432  ;;  %s19_s13 = int_to_ptr.vmem [resolvable:$true] %s18_s13 }
   0x2   :  { %p840_p0 = scmp.ne.s32.totalorder %s1048_s2, %s839_s16  ;;  %p843_p1 = scmp.lt.u32.totalorder %s839_s16, %s1048_s2 }
   0x4   :  { %p845_p2 = pnand %p843_p1, %p840_p0 }
   0x6   :  { %848 = shalt.err (!%p845_p2)
}
   0x7   :  { %s849_s21 = scalar_lea.vmem %s19_s13, 2432  ;;  %p854_p4 = scmp.lt.s32.totalorder %s19_s13, %s19_s13 }
   0x8   :  { %p850_p3 = scmp.ne.s32.totalorder %s19_s13, %s849_s21  ;;  %p855_p5 = scmp.lt.s32.totalorder %s849_s21, %s849_s21 }
   0xa   :  { %p856_p6 = por %p855_p5, %p854_p4 }
   0xc   :  { %p857_p7 = pnand %p856_p6, %p850_p3 }
   0xe   :  { %860 = shalt.err (!%p857_p7)
}
   0xf   :  { %s864_s22 = smov 128   ;;  %s865_s23 = smov 8  }
  0x10   :  { %24 = dma.hbm_to_vmem [thread:$0]  %s1048_s2, 2432, %s19_s13, [#allocation3], %s864_s22, %s864_s22, %s865_s23  }
  0x11   :  { %861 = dma.done.wait [#allocation3], 2432  }
  0x12   :  { %862 = vsyncadd [#allocation3], 4294964864  ;;  %v866_v0 = vmov 0   ;;  %v28_v1 = vld [vmem:[%s1046_s0] sm:$0xff]  ;;  %v31_v3 = vld [vmem:[#allocation2 + $0x8] sm:$0xff]  ;;  %v867_v4 = vmov 0.0|0.0   ;;  %v54_v16 = vlaneseq }
  0x13   :  { %824 = vset.pattern.permute.xlu0 %v866_v0  ;;  %v30_v2 = vld [vmem:[#allocation2] sm:$0xff]  ;;  %765 = vmatprep.subr.bf16.mxu0 %v867_v4  ;;  %vm868_vm0 = vmmov 0   ;;  %v869_v6 = vmov 0.0   ;;  %v32_v7 = vld [vmem:[#allocation2 + $0x10] sm:$0xff]  ;;  %v33_v8 = vld [vmem:[#allocation2 + $0x18] sm:$0xff]  ;;  %vm172_vm13 = vcmask 130048  }
  0x14   :  { %51 = vperm.xlu0 %824, %v28_v1   ;;  %v766_v5 = vpack.c.bf16 %v31_v3, %v30_v2  ;;  %724 = vmatprep.mubr.msk.f32.mxu0 %vm868_vm0, %v869_v6  ;;  %v34_v9 = vld [vmem:[#allocation2 + $0x20] sm:$0xff]  ;;  %v769_v10 = vpack.c.bf16 %v33_v8, %v32_v7  ;;  %v35_v11 = vld [vmem:[#allocation2 + $0x28] sm:$0xff]  ;;  %v36_v13 = vld [vmem:[#allocation2 + $0x30] sm:$0xff]  ;;  %v937_v17 = vshrl.u32 %v54_v16, 7  ;;  %v870_v37 = vmov 2102212464  }
  0x15   :  { %768 = vmatprep.subr.bf16.mxu1 %v867_v4  ;;  %743 = vmatprep.mubr.msk.f32.mxu1 %vm868_vm0, %v869_v6  ;;  %v772_v12 = vpack.c.bf16 %v35_v11, %v34_v9  ;;  %v37_v14 = vld [vmem:[#allocation2 + $0x38] sm:$0xff]  ;;  %v940_v19 = vld [vmem:[#allocation2 + $0x90] sm:$0xff]  ;;  %v871_v39 = vmov 920167782   ;;  %v872_v43 = vmov 1326507024  }
  0x16   :  { %767 = vmatpush3.bf16.msra.mxu0 %v766_v5  ;;  %770 = vmatpush3.bf16.msra.mxu1 %v769_v10  ;;  %v775_v15 = vpack.c.bf16 %v37_v14, %v36_v13  ;;  %v56_v18 = vsub.s32 3, %v937_v17  ;;  %v61_v20 = vsub.s32 4, %v937_v17  ;;  %v873_v45 = vmov 683565275   ;;  %s876_s0 = smov 126   ;;  %s877_s2 = smov 127  }
  0x17   :  { %780 = vmatprep.subr.bf16.mxu0 %v867_v4  ;;  %771 = vmatprep.subr.bf16.mxu1 %v867_v4  ;;  %v874_v47 = vmov 2475754826   ;;  %v875_v50 = vmov 2131351028   ;;  %vm251_vm15 = vcmask 523264   ;;  %s878_s28 = smov 125  }
  0x18   :  { %v57_v21 = vrot.slane %v940_v19, %v56_v18  ;;  %v62_v22 = vrot.slane %v940_v19, %v61_v20  ;;  %s879_s29 = smov 3   ;;  %s880_s30 = smov 1  }
  0x19   :  { %s881_s4 = smov 2   ;;  %s882_s5 = smov 9  }
  0x1a   :  { %773 = vmatpush3.bf16.msra.mxu1 %v772_v12  ;;  %s885_s6 = smov 7   ;;  %s886_s7 = smov 10  }
  0x1b   :  { %774 = vmatprep.subr.bf16.mxu1 %v867_v4  ;;  %s887_s10 = smov 124   ;;  %s888_s11 = smov 120  }
  0x1c   :  { %s890_s12 = smov 4  }
  0x1e   :  { %776 = vmatpush3.bf16.msra.mxu1 %v775_v15 }
  0x1f   :  { %777 = vmatprep.subr.bf16.mxu1 %v867_v4 }
  0x93   :  { %v52_v23 = vpop.permute.xlu0 %51 }
  0x94   :  { %v58_v24 = vmul.f32 %v57_v21, %v52_v23 }
  0x96   :  { %v945_v25 = vadd.f32 %v62_v22, %v58_v24 }
  0x98   :  { %v67_v26 = vand.u32 2139095040, %v945_v25  ;;  %v64_v27 = vand.u32 2147483647, %v945_v25  ;;  %vm66_vm8 = vcmp.lt.s32.totalorder %v945_v25, 0  ;;  %vm156_vm14 = vweird.f32 %v945_v25 }
  0x9a   :  { %v68_v28 = vshrl.u32 %v67_v26, 23  ;;  %v71_v30 = vand.u32 8388607, %v64_v27  ;;  %vm65_vm9 = vcmp.le.f32.partialorder %v64_v27, 0.7853982 }
  0x9c   :  { %v692_v29 = vadd.s32 4294967169, %v68_v28  ;;  %v72_v33 = vor.u32 8388608, %v71_v30 }
  0x9e   :  { %v74_v31 = vadd.s32 1, %v692_v29  ;;  %v112_v41 = vshll.u32 %v72_v33, 8 }
  0xa0   :  { %vm75_vm1 = vcmp.gt.s32.totalorder %v74_v31, 0 }
  0xa1   :  { %v76_v32 = vsel %vm75_vm1, %v74_v31, 0  ;;  %vm681_vm1 = vcmask 64512  }
  0xa2   :  { %v78_v34 = vand.u32 31, %v76_v32  ;;  %v77_v35 = vshrl.u32 %v76_v32, 5 }
  0xa4   :  { %v79_v36 = vsub.s32 32, %v78_v34  ;;  %v90_v38 = vshll.u32 %v870_v37, %v78_v34  ;;  %v93_v40 = vshll.u32 %v871_v39, %v78_v34  ;;  %v81_v46 = vshll.u32 %v873_v45, %v78_v34 }
  0xa5   :  { %v84_v49 = vshll.u32 %v874_v47, %v78_v34  ;;  %v87_v52 = vshll.u32 %v875_v50, %v78_v34  ;;  %vm99_vm2 = vcmp.lt.s32.totalorder %v77_v35, 4  ;;  %vm96_vm3 = vcmp.lt.s32.totalorder %v77_v35, 1 }
  0xa6   :  { %v91_v42 = vshrl.u32 %v871_v39, %v79_v36  ;;  %v94_v44 = vshrl.u32 %v872_v43, %v79_v36  ;;  %v82_v48 = vshrl.u32 %v874_v47, %v79_v36  ;;  %v85_v51 = vshrl.u32 %v875_v50, %v79_v36 }
  0xa7   :  { %v88_v53 = vshrl.u32 %v870_v37, %v79_v36  ;;  %v80_v57 = vshrl.u32 %v873_v45, %v79_v36  ;;  %vm97_vm4 = vcmp.lt.s32.totalorder %v77_v35, 2  ;;  %vm98_vm5 = vcmp.lt.s32.totalorder %v77_v35, 3 }
  0xa8   :  { %v92_v54 = vor.u32 %v91_v42, %v90_v38  ;;  %v95_v55 = vor.u32 %v94_v44, %v93_v40  ;;  %v83_v56 = vor.u32 %v82_v48, %v81_v46  ;;  %v86_v58 = vor.u32 %v85_v51, %v84_v49 }
  0xa9   :  { %v89_v59 = vor.u32 %v88_v53, %v87_v52 }
  0xaa   :  { %v105_v60 = vsel %vm99_vm2, %v92_v54, 920167782  ;;  %v109_v61 = vsel %vm99_vm2, %v95_v55, 1326507024  ;;  %v104_v63 = vsel %vm96_vm3, %v83_v56, %v86_v58  ;;  %v100_v2 = vsel %vm96_vm3, %v80_v57, %v83_v56 }
  0xab   :  { %v101_v62 = vsel %vm99_vm2, %v89_v59, 2102212464  ;;  %v106_v0 = vsel %vm98_vm5, %v89_v59, %v105_v60  ;;  %v108_v1 = vsel %vm96_vm3, %v86_v58, %v89_v59  ;;  %v110_v7 = vsel %vm98_vm5, %v92_v54, %v109_v61  ;;  %v39_v59 = vld [vmem:[#allocation2 + $0x48] sm:$0xff]  ;;  %v40_v61 = vld [vmem:[#allocation2 + $0x50] sm:$0xff] }
  0xac   :  { %v102_v3 = vsel %vm98_vm5, %v86_v58, %v101_v62  ;;  %v107_v5 = vsel %vm97_vm4, %v104_v63, %v106_v0  ;;  %v111_v8 = vsel %vm97_vm4, %v108_v1, %v110_v7  ;;  %v38_v58 = vld [vmem:[#allocation2 + $0x40] sm:$0xff]  ;;  %v41_v62 = vld [vmem:[#allocation2 + $0x58] sm:$0xff]  ;;  %v43_v1 = vld [vmem:[#allocation2 + $0x68] sm:$0xff]  ;;  %vm683_vm2 = vcmask 97280  }
  0xad   :  { %v951_v9 = vmul.u32.u64.low %v112_v41, %v107_v5  ;;  %v952_v10 = vmul.u32.u64.high %v112_v41, %v107_v5, %v951_v9  ;;  %v954_v11 = vmul.u32.u64.low %v112_v41, %v111_v8  ;;  %v955_v12 = vmul.u32.u64.high %v112_v41, %v111_v8, %v954_v11  ;;  %v42_v63 = vld [vmem:[#allocation2 + $0x60] sm:$0xff] }
  0xae   :  { %v103_v13 = vsel %vm97_vm4, %v100_v2, %v102_v3  ;;  %v778_v60 = vpack.c.bf16 %v39_v59, %v38_v58  ;;  %v781_v0 = vpack.c.bf16 %v41_v62, %v40_v61  ;;  %v784_v2 = vpack.c.bf16 %v43_v1, %v42_v63  ;;  %v45_v3 = vld [vmem:[#allocation2 + $0x78] sm:$0xff] }
  0xaf   :  { %v122_v14 = vadd.s32 1, %v952_v10  ;;  %v119_v15 = vmul.u32 %v112_v41, %v103_v13  ;;  %vm121_vm6 = vc.u32 %v955_v12, %v951_v9  ;;  %v120_v31 = vadd.s32 %v951_v9, %v955_v12  ;;  %v46_v12 = vld [vmem:[#allocation2 + $0x80] sm:$0xff]  ;;  %v47_v13 = vld [vmem:[#allocation2 + $0x88] sm:$0xff] }
  0xb0   :  { %779 = vmatpush3.bf16.msra.mxu1 %v778_v60 }
  0xb1   :  { %v123_v16 = vsel %vm121_vm6, %v122_v14, %v952_v10  ;;  %v790_v14 = vpack.c.bf16 %v47_v13, %v46_v12 }
  0xb2   :  { %v124_v18 = vadd.s32 %v123_v16, %v119_v15  ;;  %v249_v15 = vsub.s32 1, %v937_v17 }
  0xb4   :  { %v125_v20 = vadd.s32 536870912, %v124_v18  ;;  %v250_v16 = vrot.slane %v940_v19, %v249_v15 }
  0xb6   :  { %v126_v21 = vshrl.u32 %v125_v20, 30 }
  0xb8   :  { %v127_v22 = vshll.u32 %v126_v21, 30  ;;  %v150_v43 = vsub.s32 4, %v126_v21 }
  0xba   :  { %v128_v23 = vsub.s32 %v124_v18, %v127_v22  ;;  %v151_v46 = vsel %vm66_vm8, %v150_v43, %v126_v21  ;;  %v328_v22 = vsub.s32 2, %v937_v17 }
  0xbb   :  { %v153_v48 = vsel %vm65_vm9, 0, %v151_v46 }
  0xbc   :  { %v130_v24 = vsub.s32 0, %v128_v23  ;;  %v157_v49 = vadd.s32 3, %v153_v48  ;;  %v884_v48 = vmov 10  }
  0xbd   :  { %826 = vset.pattern.permute.xlu0 %v884_v48 }
  0xbe   :  { %v693_v26 = vmin.u32 %v130_v24, %v128_v23  ;;  %v158_v50 = vand.u32 3, %v157_v49 }
  0xc0   :  { %v132_v28 = vclz %v693_v26  ;;  %vm163_vm10 = vcmp.eq.s32.totalorder %v158_v50, 2  ;;  %vm160_vm11 = vcmp.eq.s32.totalorder %v158_v50, 0  ;;  %vm159_vm12 = vcmp.lt.s32.totalorder %v158_v50, 2 }
  0xc2   :  { %v694_v29 = vadd.s32 4294967294, %v132_v28 }
  0xc4   :  { %vm695_vm7 = vcmp.lt.s32.totalorder %v694_v29, 0 }
  0xc5   :  { %v135_v30 = vsel %vm695_vm7, 0, %v694_v29 }
  0xc6   :  { %v136_v32 = vsub.s32 32, %v135_v30  ;;  %v140_v33 = vsub.s32 4294967266, %v135_v30  ;;  %v137_v34 = vshll.u32 %v128_v23, %v135_v30  ;;  %v329_v23 = vrot.slane %v940_v19, %v328_v22 }
  0xc8   :  { %v138_v35 = vshrl.u32 %v120_v31, %v136_v32  ;;  %v141_v36 = vadd.s32 127, %v140_v33 }
  0xca   :  { %v139_v37 = vor.u32 %v138_v35, %v137_v34  ;;  %v142_v38 = vshll.u32 %v141_v36, 23 }
  0xcc   :  { %v143_v39 = vor.u32 4788187, %v142_v38  ;;  %v146_v41 = vcvt.s32.f32 %v139_v37 }
  0xce   :  { %v144_v40 = vand.u32 2147483647, %v143_v39 }
  0xd0   :  { %v147_v42 = vmul.f32 %v146_v41, %v144_v40 }
  0xd2   :  { %v148_v44 = vxor.u32 2147483648, %v147_v42 }
  0xd4   :  { %v149_v45 = vsel %vm66_vm8, %v148_v44, %v147_v42 }
  0xd5   :  { %v152_v47 = vsel %vm65_vm9, %v945_v25, %v149_v45  ;;  %v44_v25 = vld [vmem:[#allocation2 + $0x70] sm:$0xff] }
  0xd6   :  { %833 = vcosq.f32 %v152_v47  ;;  %v787_v5 = vpack.c.bf16 %v45_v3, %v44_v25 }
  0xd7   :  { %835 = vsinq.f32 %v152_v47  ;;  %v883_v47 = vmov 9  }
  0xd8   :  { %825 = vset.pattern.permute.xlu1 %v883_v47 }
  0xe0   :  { %v834_v51 = vpop.eup %833 }
  0xe1   :  { %v836_v52 = vpop.eup %835  ;;  %v164_v53 = vxor.u32 2147483648, %v834_v51 }
  0xe2   :  { %v161_v54 = vxor.u32 2147483648, %v836_v52 }
  0xe3   :  { %v165_v55 = vsel %vm163_vm10, %v164_v53, %v836_v52 }
  0xe4   :  { %v162_v56 = vsel %vm160_vm11, %v834_v51, %v161_v54 }
  0xe5   :  { %v166_v27 = vsel %vm159_vm12, %v162_v56, %v165_v55 }
  0xe6   :  { %v167_v57 = vsel %vm156_vm14, nan, %v166_v27 }
  0xe7   :  { %725 = vmatmul.mubr.msk.f32.vlgmr.msra.gmra.mrb[0].mxu0 %vm172_vm13, %v167_v57 }
  0xe8   :  { %762 = vmatprep.mubr.msk.f32.mxu0 %vm868_vm0, %v869_v6  ;;  %782 = vmatpush3.bf16.msra.mxu0 %v781_v0  ;;  %v170_v6 = vsub.s32 0, %v937_v17  ;;  %vm679_vm0 = vcmask 31744  }
  0xe9   :  { %783 = vmatprep.subr.bf16.mxu0 %v867_v4 }
  0xea   :  { %v171_v7 = vrot.slane %v940_v19, %v170_v6 }
  0xec   :  { %785 = vmatpush3.bf16.msra.mxu0 %v784_v2 }
  0xed   :  { %786 = vmatprep.subr.bf16.mxu0 %v867_v4 }
  0xf0   :  { %788 = vmatpush3.bf16.msra.mxu0 %v787_v5 }
  0xf1   :  { %789 = vmatprep.subr.bf16.mxu0 %v867_v4 }
  0xf4   :  { %791 = vmatpush3.bf16.msra.mxu0 %v790_v14 }
 0x1ba   :  { %v242_v8 = vpop.f32.mrb[0].mxu0 }
 0x1bb   :  { %v243_v9 = vadd.f32 %v242_v8, %v171_v7  ;;  %v726_v10 = vpop.f32.mrb[1].mxu0 }
 0x1bd   :  { %v246_v11 = vmax.f32 %v243_v9, 0.0 }
 0x1bf   :  { %744 = vmatmul.mubr.msk.f32.vlgmr.msra.gmra.mrb[0].mxu1 %vm251_vm15, %v246_v11 }
 0x292   :  { %v321_v18 = vpop.f32.mrb[0].mxu1 }
 0x293   :  { %v322_v4 = vadd.f32 %v321_v18, %v250_v16  ;;  %v745_v20 = vpop.f32.mrb[1].mxu1 }
 0x295   :  { %v325_v21 = vmax.f32 %v322_v4, 0.0 }
 0x297   :  { %763 = vmatmul.mubr.msk.f32.vlgmr.msra.gmra.mrb[2].mxu0 %vm251_vm15, %v325_v21 }
 0x36a   :  { %v399_v24 = vpop.f32.mrb[2].mxu0 }
 0x36b   :  { %v978_v26 = vadd.f32 %v399_v24, %v329_v23  ;;  %v764_v28 = vpop.f32.mrb[3].mxu0 }
 0x36d   :  { %v403_v29 = vmul.f32 %v978_v26, %v978_v26 }
 0x36f   :  { %409 = vrot.lane.b32.xlu1 %v403_v29, %s876_s0  ;;  %405 = vrot.lane.b32.xlu0 %v403_v29, %s877_s2 }
 0x373   :  { %413 = vrot.lane.b32.xlu1 %v403_v29, %s878_s28 }
 0x3e1   :  { %v410_v30 = vpop.permute.xlu1 %409  ;;  %v406_v31 = vpop.permute.xlu0 %405 }
 0x3e2   :  { %v408_v17 = vadd.f32 %v406_v31, %v403_v29 }
 0x3e4   :  { %v412_v32 = vadd.f32 %v410_v30, %v408_v17 }
 0x3e5   :  { %v414_v19 = vpop.permute.xlu1 %413 }
 0x3e6   :  { %v416_v33 = vadd.f32 %v414_v19, %v412_v32 }
 0x3e8   :  { %v417_v34 = vadd.f32 1e-12, %v416_v33 }
 0x3ea   :  { %837 = vrsqrt.f32 %v417_v34 }
 0x3f4   :  { %v838_v35 = vpop.eup %837 }
 0x3f5   :  { %429 = vrot.lane.b32.xlu1 %v838_v35, %s879_s29  ;;  %421 = vrot.lane.b32.xlu0 %v838_v35, %s880_s30  ;;  %v419_v42 = vmul.f32 %v838_v35, %v978_v26 }
 0x3f9   :  { %425 = vrot.lane.b32.xlu0 %v838_v35, %s881_s4 }
 0x467   :  { %v430_v36 = vpop.permute.xlu1 %429  ;;  %v422_v37 = vpop.permute.xlu0 %421 }
 0x468   :  { %v432_v38 = vmul.f32 %v430_v36, %v978_v26  ;;  %v424_v39 = vmul.f32 %v422_v37, %v978_v26 }
 0x46a   :  { %448 = vrot.lane.b32.xlu0 %v432_v38, %s878_s28  ;;  %486 = vrot.lane.b32.xlu1 %v424_v39, %s877_s2  ;;  %v434_v49 = vmul.f32 %v432_v38, %v432_v38  ;;  %v474_v3 = vmul.f32 %v424_v39, %v424_v39 }
 0x46b   :  { %v426_v40 = vpop.permute.xlu0 %425 }
 0x46c   :  { %v428_v41 = vmul.f32 %v426_v40, %v978_v26  ;;  %v1021_v40 = vld [vmem:[%s1047_s1] sm:$0xff]  ;;  %s889_s1 = smov 116  }
 0x46e   :  { %481 = vrot.lane.b32.xlu0 %v432_v38, %s877_s2  ;;  %462 = vrot.lane.b32.xlu1 %v428_v41, %s876_s0  ;;  %v1003_v52 = vmul.f32 %v428_v41, %v428_v41 }
 0x472   :  { %531 = vrot.lane.b32.xlu0 %v978_v26, %s882_s5 }
 0x476   :  { %443 = vrot.lane.b32.xlu0 %v428_v41, %s877_s2 }
 0x47a   :  { %458 = vrot.lane.b32.xlu0 %v432_v38, %s876_s0 }
 0x4dc   :  { %v487_v43 = vpop.permute.xlu1 %486  ;;  %v449_v50 = vpop.permute.xlu0 %448 }
 0x4dd   :  { %v489_v44 = vmul.f32 %v487_v43, %v419_v42  ;;  %v451_v51 = vmul.f32 %v449_v50, %v419_v42 }
 0x4df   :  { %491 = vrot.lane.b32.xlu1 %v489_v44, %s881_s4 }
 0x4e0   :  { %v463_v45 = vpop.permute.xlu1 %462  ;;  %v482_v53 = vpop.permute.xlu0 %481 }
 0x4e1   :  { %v465_v46 = vmul.f32 %v463_v45, %v419_v42  ;;  %v484_v56 = vmul.f32 %v482_v53, %v428_v41 }
 0x4e3   :  { %512 = vrot.lane.b32.xlu1 %v978_v26, %s865_s23  ;;  %467 = vrot.lane.b32.xlu0 %v465_v46, %s880_s30 }
 0x4e4   :  { %v532_v54 = vpop.permute.xlu0 %531 }
 0x4e7   :  { %475 = vrot.lane.b32.xlu1 %v434_v49, %s876_s0  ;;  %521 = vrot.lane.b32.xlu0 %v978_v26, %s885_s6 }
 0x4e8   :  { %v444_v55 = vpop.permute.xlu0 %443 }
 0x4e9   :  { %v446_v8 = vmul.f32 %v444_v55, %v424_v39 }
 0x4eb   :  { %453 = vrot.lane.b32.xlu1 %v451_v51, %s880_s30 }
 0x4ec   :  { %v459_v27 = vpop.permute.xlu0 %458 }
 0x4ed   :  { %v461_v60 = vmul.f32 %v459_v27, %v424_v39 }
 0x4ef   :  { %501 = vrot.lane.b32.xlu1 %v1003_v52, %s877_s2 }
 0x551   :  { %v492_v57 = vpop.permute.xlu1 %491 }
 0x552   :  { %v494_v58 = vsub.f32 %v484_v56, %v492_v57  ;;  %v498_v59 = vadd.f32 %v492_v57, %v484_v56 }
 0x554   :  { %v495_v61 = vmul.f32 2.0, %v494_v58  ;;  %v499_v62 = vmul.f32 2.0, %v498_v59 }
 0x555   :  { %v513_v63 = vpop.permute.xlu1 %512  ;;  %v468_v0 = vpop.permute.xlu0 %467 }
 0x556   :  { %v537_v1 = vmul.f32 %v513_v63, %v499_v62  ;;  %v470_v2 = vadd.f32 %v468_v0, %v461_v60  ;;  %v545_v25 = vmul.f32 %v532_v54, %v495_v61  ;;  %v496_v6 = vsub.f32 %v461_v60, %v468_v0 }
 0x558   :  { %539 = vrot.lane.b32.xlu0 %v537_v1, %s877_s2  ;;  %547 = vrot.lane.b32.xlu1 %v545_v25, %s877_s2  ;;  %v497_v11 = vmul.f32 2.0, %v496_v6  ;;  %v471_v30 = vmul.f32 2.0, %v470_v2 }
 0x559   :  { %v476_v5 = vpop.permute.xlu1 %475  ;;  %v522_v14 = vpop.permute.xlu0 %521 }
 0x55a   :  { %v478_v7 = vadd.f32 %v476_v5, %v474_v3  ;;  %v524_v20 = vmul.f32 %v522_v14, %v497_v11  ;;  %v544_v31 = vmul.f32 %v532_v54, %v471_v30 }
 0x55c   :  { %v479_v9 = vmul.f32 2.0, %v478_v7  ;;  %508 = vrot.lane.b32.xlu0 %v978_v26, %s886_s7  ;;  %436 = vrot.lane.b32.xlu1 %v434_v49, %s877_s2 }
 0x55d   :  { %v454_v10 = vpop.permute.xlu1 %453 }
 0x55e   :  { %v480_v12 = vsub.f32 1.0, %v479_v9  ;;  %v456_v13 = vsub.f32 %v446_v8, %v454_v10  ;;  %v472_v15 = vadd.f32 %v454_v10, %v446_v8 }
 0x560   :  { %v535_v16 = vmul.f32 %v513_v63, %v480_v12  ;;  %v457_v18 = vmul.f32 2.0, %v456_v13  ;;  %640 = vperm.xlu0 %826, %v495_v61   ;;  %601 = vperm.xlu1 %825, %v480_v12   ;;  %v473_v22 = vmul.f32 2.0, %v472_v15 }
 0x561   :  { %v502_v4 = vpop.permute.xlu1 %501 }
 0x562   :  { %v534_v21 = vmul.f32 %v532_v54, %v457_v18  ;;  %v504_v23 = vadd.f32 %v502_v4, %v474_v3  ;;  %v515_v28 = vmul.f32 %v513_v63, %v473_v22 }
 0x564   :  { %526 = vrot.lane.b32.xlu0 %v524_v20, %s880_s30  ;;  %827 = vset.pattern.permute.xlu1 %v884_v48  ;;  %v536_v24 = vadd.f32 %v535_v16, %v534_v21  ;;  %v505_v26 = vmul.f32 2.0, %v504_v23 }
 0x565   :  { %612 = vperm.xlu1 %827, %v499_v62   ;;  %829 = vset.pattern.permute.xlu0 %v883_v47 }
 0x566   :  { %v506_v29 = vsub.f32 1.0, %v505_v26 }
 0x568   :  { %v551_v19 = vmul.f32 %v522_v14, %v506_v29 }
 0x569   :  { %517 = vrot.lane.b32.xlu1 %v515_v28, %s880_s30 }
 0x56a   :  { %828 = vset.pattern.permute.xlu1 %v883_v47 }
 0x56d   :  { %651 = vperm.xlu1 %828, %v506_v29  }
 0x5ca   :  { %v540_v17 = vpop.permute.xlu0 %539  ;;  %v548_v32 = vpop.permute.xlu1 %547 }
 0x5cb   :  { %v542_v33 = vadd.f32 %v540_v17, %v536_v24  ;;  %v550_v34 = vadd.f32 %v548_v32, %v544_v31 }
 0x5cd   :  { %v543_v35 = vsub.f32 0.0, %v542_v33  ;;  %v552_v36 = vadd.f32 %v551_v19, %v550_v34 }
 0x5ce   :  { %v437_v38 = vpop.permute.xlu1 %436  ;;  %v509_v43 = vpop.permute.xlu0 %508 }
 0x5cf   :  { %v553_v37 = vsub.f32 0.0, %v552_v36  ;;  %623 = vperm.xlu0 %829, %v543_v35   ;;  %v439_v39 = vadd.f32 %v437_v38, %v1003_v52 }
 0x5d1   :  { %662 = vperm.xlu1 %828, %v553_v37   ;;  %v440_v41 = vmul.f32 2.0, %v439_v39 }
 0x5d3   :  { %595 = vperm.xlu0 %829, %v457_v18   ;;  %v441_v45 = vsub.f32 1.0, %v440_v41 }
 0x5d5   :  { %562 = vperm.xlu1 %828, %v473_v22   ;;  %v511_v51 = vmul.f32 %v509_v43, %v441_v45 }
 0x5d7   :  { %573 = vperm.xlu0 %829, %v497_v11  }
 0x5d9   :  { %634 = vperm.xlu1 %828, %v471_v30  }
 0x5db   :  { %831 = vset.pattern.permute.xlu0 %v884_v48 }
 0x5dd   :  { %830 = vset.pattern.permute.xlu1 %v884_v48 }
 0x5df   :  { %v602_v42 = vpop.permute.xlu1 %601  ;;  %v641_v46 = vpop.permute.xlu0 %640 }
 0x5e0   :  { %v604_v44 = vmul.f32 %v602_v42, %v1021_v40  ;;  %v643_v57 = vmul.f32 %v641_v46, %v1021_v40 }
 0x5e2   :  { %606 = vrot.lane.b32.xlu0 %v604_v44, %s887_s10 }
 0x5e3   :  { %v527_v54 = vpop.permute.xlu0 %526 }
 0x5e4   :  { %v613_v49 = vpop.permute.xlu1 %612 }
 0x5e5   :  { %v615_v50 = vmul.f32 %v613_v49, %v1021_v40 }
 0x5e7   :  { %617 = vrot.lane.b32.xlu0 %v615_v50, %s888_s11 }
 0x5e8   :  { %v518_v52 = vpop.permute.xlu1 %517 }
 0x5e9   :  { %v520_v53 = vadd.f32 %v518_v52, %v511_v51 }
 0x5eb   :  { %v529_v48 = vadd.f32 %v527_v54, %v520_v53 }
 0x5ec   :  { %v652_v56 = vpop.permute.xlu1 %651 }
 0x5ed   :  { %v530_v55 = vsub.f32 0.0, %v529_v48  ;;  %v654_v27 = vmul.f32 %v652_v56, %v1021_v40 }
 0x5ef   :  { %584 = vperm.xlu1 %830, %v530_v55  }
 0x5f3   :  { %656 = vrot.lane.b32.xlu1 %v654_v27, %s888_s11 }
 0x5f7   :  { %645 = vrot.lane.b32.xlu1 %v643_v57, %s887_s10 }
 0x64e   :  { %v624_v58 = vpop.permute.xlu0 %623 }
 0x64f   :  { %v626_v59 = vmul.f32 %v624_v58, %v1021_v40 }
 0x650   :  { %v663_v60 = vpop.permute.xlu1 %662 }
 0x651   :  { %v665_v61 = vmul.f32 %v663_v60, %v1021_v40  ;;  %628 = vrot.lane.b32.xlu0 %v626_v59, %s889_s1 }
 0x652   :  { %v596_v62 = vpop.permute.xlu0 %595 }
 0x653   :  { %667 = vrot.lane.b32.xlu1 %v665_v61, %s889_s1  ;;  %v598_v9 = vmul.f32 %v596_v62, %v1021_v40 }
 0x654   :  { %v563_v63 = vpop.permute.xlu1 %562 }
 0x655   :  { %v565_v0 = vmul.f32 %v563_v63, %v1021_v40  ;;  %556 = vperm.xlu0 %831, %v441_v45  }
 0x656   :  { %v574_v1 = vpop.permute.xlu0 %573 }
 0x657   :  { %567 = vrot.lane.b32.xlu1 %v565_v0, %s887_s10  ;;  %v576_v2 = vmul.f32 %v574_v1, %v1021_v40 }
 0x658   :  { %v635_v25 = vpop.permute.xlu1 %634 }
 0x659   :  { %832 = vset.pattern.permute.xlu0 %v883_v47  ;;  %v637_v10 = vmul.f32 %v635_v25, %v1021_v40 }
 0x65a   :  { %v607_v7 = vpop.permute.xlu0 %606 }
 0x65b   :  { %578 = vrot.lane.b32.xlu1 %v576_v2, %s888_s11  ;;  %v609_v12 = vadd.f32 %v607_v7, %v598_v9 }
 0x65e   :  { %v618_v11 = vpop.permute.xlu0 %617 }
 0x65f   :  { %v620_v14 = vadd.f32 %v618_v11, %v609_v12 }
 0x66e   :  { %v585_v3 = vpop.permute.xlu1 %584 }
 0x66f   :  { %v587_v5 = vmul.f32 %v585_v3, %v1021_v40 }
 0x671   :  { %589 = vrot.lane.b32.xlu0 %v587_v5, %s889_s1 }
 0x672   :  { %v657_v6 = vpop.permute.xlu1 %656 }
 0x676   :  { %v646_v8 = vpop.permute.xlu1 %645 }
 0x677   :  { %v648_v13 = vadd.f32 %v646_v8, %v637_v10 }
 0x679   :  { %v659_v47 = vadd.f32 %v657_v6, %v648_v13 }
 0x6c3   :  { %v629_v15 = vpop.permute.xlu0 %628 }
 0x6c4   :  { %v631_v16 = vadd.f32 %v629_v15, %v620_v14 }
 0x6c5   :  { %v668_v18 = vpop.permute.xlu1 %667 }
 0x6c6   :  { %v670_v4 = vadd.f32 %v668_v18, %v659_v47  ;;  %672 = vrot.lane.b32.xlu1 %v631_v16, %s890_s12 }
 0x6c8   :  { %676 = vrot.lane.b32.xlu0 %v670_v4, %s865_s23 }
 0x6c9   :  { %v568_v22 = vpop.permute.xlu1 %567 }
 0x6cd   :  { %v579_v24 = vpop.permute.xlu1 %578 }
 0x6d4   :  { %v557_v20 = vpop.permute.xlu0 %556 }
 0x6d5   :  { %v559_v21 = vmul.f32 %v557_v20, %v1021_v40 }
 0x6d7   :  { %v570_v23 = vadd.f32 %v568_v22, %v559_v21 }
 0x6d9   :  { %v581_v28 = vadd.f32 %v579_v24, %v570_v23 }
 0x6e3   :  { %v590_v26 = vpop.permute.xlu0 %589 }
 0x6e4   :  { %v592_v29 = vadd.f32 %v590_v26, %v581_v28 }
 0x738   :  { %v673_v30 = vpop.permute.xlu1 %672 }
 0x739   :  { %v680_v31 = vsel %vm679_vm0, %v592_v29, %v673_v30 }
 0x73a   :  { %v677_v17 = vpop.permute.xlu0 %676 }
 0x73b   :  { %v682_v32 = vsel %vm681_vm1, %v680_v31, %v677_v17 }
 0x73c   :  { %v684_v19 = vsel %vm683_vm2, %v682_v32, %v1021_v40 }
 0x73d   :  { %v685_v33 = vsel %vm172_vm13, %v684_v19, 0.0 }
 0x73e   :  { %686 = vst [vmem:[%s1049_s3] sm:$0xff] %v685_v33 }
 0x73f   :  { %691 = vsyncpa [#allocation3], 1 }

</bundles_post_ra>
